<compile_context>
chip_gen: v7x
topology: tpu7x:2x2x1
jax: 0.10.0
libtpu: 0.0.40
codegen_flags: <defaults>
</compile_context>

<pallas_src>
import functools

import jax
import jax.numpy as jnp
from jax import lax
from jax.experimental import pallas as pl
from jax.experimental.pallas import tpu as pltpu


# ---------------------------------------------------------------------------
# Kernel 1: one-shot projection (x @ W_aug), run once for the whole graph.
# ---------------------------------------------------------------------------
def proj_kernel(x_ref, waug_ref, wn_row_ref, h_ref, s_ref, nrow_ref, *, f_out):
    x = x_ref[...]
    # h_aug = x @ [W | W@a_self]   -> (N, F+1); rank-1 self projection folded in.
    haug = jnp.dot(x, waug_ref[...], preferred_element_type=jnp.float32)
    h_ref[...] = haug[:, :f_out].astype(h_ref.dtype)      # bf16, cast once here
    s_ref[...] = haug[:, f_out:f_out + 1]                 # (N, 1) self logits
    # neighbor logits as a row vector: (1,in) . (N,in)^T -> (1, N), no transpose op.
    nrow_ref[...] = lax.dot_general(
        wn_row_ref[...], x,
        dimension_numbers=(((1,), (1,)), ((), ())),
        preferred_element_type=jnp.float32)


# ---------------------------------------------------------------------------
# Kernel 2: attention + aggregation for one row block of TM query nodes.
# ---------------------------------------------------------------------------
def gat_attn_kernel(s_ref, nrow_ref, adj_ref, m_ref, h_ref, out_ref,
                    *, alpha, concat):
    # s_ref: (TM,1)  nrow_ref: (1,N)  adj_ref/m_ref: (TM,N)  h_ref: (N,F) bf16
    attn = s_ref[...] + nrow_ref[...]                      # (TM, N) logits
    attn = attn * m_ref[...]
    attn = jnp.where(attn >= 0, attn, alpha * attn)        # LeakyReLU(alpha)
    attn = jnp.where(adj_ref[...] > 0, attn, jnp.float32(-9.0e15))

    # row-wise numerically stable softmax; divide -> EUP approx reciprocal
    row_max = jnp.max(attn, axis=1, keepdims=True)
    e = jnp.exp(attn - row_max)
    denom = jnp.sum(e, axis=1, keepdims=True)
    attention = e * pl.reciprocal(denom, approx=True)

    # dominant matmul in bf16 (full-rate MXU, f32 accumulation)
    h_prime = jnp.dot(attention.astype(jnp.bfloat16), h_ref[...],
                      preferred_element_type=jnp.float32)
    if concat:
        # ELU, negative branch clamped so expm1 never overflows on positives
        h_prime = jnp.where(h_prime > 0, h_prime,
                            jnp.expm1(jnp.minimum(h_prime, 0.0)))
    out_ref[...] = h_prime.astype(out_ref.dtype)


# ---------------------------------------------------------------------------
# Wrapper
# ---------------------------------------------------------------------------
def gat_layer(x, W, a_self, a_neighs, adj, M, *, alpha, concat=True,
              tm=128, vmem_limit_bytes=48 * 1024 * 1024):
    N, f_in = x.shape
    f_out = W.shape[1]
    tm = min(tm, N)

    # Fold the rank-1 projections into the weights (wrapper-side, one-time).
    ws = W @ a_self                              # (f_in, 1)
    w_aug = jnp.concatenate([W, ws], axis=1)     # (f_in, f_out + 1)
    wn_row = (W @ a_neighs).T                    # (1, f_in)

    # --- projection: h (bf16, resident), self-logit column, neighbor-logit row
    h_bf16, s_col, n_row = pl.pallas_call(
        functools.partial(proj_kernel, f_out=f_out),
        out_shape=(jax.ShapeDtypeStruct((N, f_out), jnp.bfloat16),
                   jax.ShapeDtypeStruct((N, 1), jnp.float32),
                   jax.ShapeDtypeStruct((1, N), jnp.float32)),
        in_specs=[pl.BlockSpec(memory_space=pltpu.MemorySpace.VMEM)] * 3,
        out_specs=(pl.BlockSpec(memory_space=pltpu.MemorySpace.VMEM),
                   pl.BlockSpec(memory_space=pltpu.MemorySpace.VMEM),
                   pl.BlockSpec(memory_space=pltpu.MemorySpace.VMEM)),
    )(x, w_aug, wn_row)

    # --- attention: grid over row blocks; adj/M streamed, h/n_row resident
    grid = (pl.cdiv(N, tm),)
    cost = pl.CostEstimate(
        flops=2 * N * N * f_out + 8 * N * N,
        transcendentals=N * N + N,
        bytes_accessed=4 * (2 * N * N + 2 * N) + 2 * N * f_out + 4 * N * f_out,
    )
    out = pl.pallas_call(
        functools.partial(gat_attn_kernel, alpha=alpha, concat=concat),
        out_shape=jax.ShapeDtypeStruct((N, f_out), jnp.float32),
        grid_spec=pltpu.PrefetchScalarGridSpec(
            num_scalar_prefetch=0,
            grid=grid,
            in_specs=[
                pl.BlockSpec((tm, 1), lambda i: (i, 0)),     # self-logit slab
                pl.BlockSpec((1, N), lambda i: (0, 0)),      # neighbor row (resident)
                pl.BlockSpec((tm, N), lambda i: (i, 0)),     # adj slab (pipelined)
                pl.BlockSpec((tm, N), lambda i: (i, 0)),     # M slab (pipelined)
                pl.BlockSpec((N, f_out), lambda i: (0, 0)),  # h (resident, bf16)
            ],
            out_specs=pl.BlockSpec((tm, f_out), lambda i: (i, 0)),
        ),
        compiler_params=pltpu.CompilerParams(
            dimension_semantics=("parallel",),
            vmem_limit_bytes=vmem_limit_bytes,
        ),
        cost_estimate=cost,
    )(s_col, n_row, adj, M, h_bf16)
    return out


# ---------------------------------------------------------------------------
# Reference / demo
# ---------------------------------------------------------------------------
def xavier_uniform(key, shape, gain):
    fan_in, fan_out = shape[0], shape[1]
    bound = gain * jnp.sqrt(6.0 / (fan_in + fan_out))
    return jax.random.uniform(key, shape, jnp.float32, minval=-bound, maxval=bound)


def gat_reference(x, W, a_self, a_neighs, adj, M, *, alpha, concat=True):
    h = x @ W
    s = h @ a_self
    n = h @ a_neighs
    attn = s + n.T
    attn = attn * M
    attn = jnp.where(attn >= 0, attn, alpha * attn)
    attn = jnp.where(adj > 0, attn, jnp.float32(-9.0e15))
    attention = jax.nn.softmax(attn, axis=1)
    h_prime = attention @ h
    if concat:
        h_prime = jnp.where(h_prime > 0, h_prime,
                            jnp.expm1(jnp.minimum(h_prime, 0.0)))
    return h_prime


if __name__ == "__main__":
    N = 256            # number of graph nodes
    in_features = 64
    out_features = 128  # lane-dense output (multiple of 128)
    alpha = 0.2         # LeakyReLU negative slope

    key = jax.random.PRNGKey(0)
    k_x, k_w, k_as, k_an, k_adj, k_m = jax.random.split(key, 6)

    # deterministic synthetic parameters (xavier_uniform, gain=1.414 as in __init__)
    W = xavier_uniform(k_w, (in_features, out_features), gain=1.414)
    a_self = xavier_uniform(k_as, (out_features, 1), gain=1.414)
    a_neighs = xavier_uniform(k_an, (out_features, 1), gain=1.414)

    # deterministic inputs
    x = jax.random.normal(k_x, (N, in_features), jnp.float32)
    adj = (jax.random.uniform(k_adj, (N, N)) < 0.3).astype(jnp.float32)
    adj = jnp.clip(adj + jnp.eye(N, dtype=jnp.float32), 0.0, 1.0)  # self-loops
    M = jax.random.uniform(k_m, (N, N), jnp.float32, minval=0.0, maxval=1.0)

    out = gat_layer(x, W, a_self, a_neighs, adj, M, alpha=alpha, concat=True)
    out = jax.block_until_ready(out)

    ref = gat_reference(x, W, a_self, a_neighs, adj, M, alpha=alpha, concat=True)
    assert out.shape == (N, out_features)
    # bf16 MXU operands + approx reciprocal -> slightly relaxed tolerance
    assert jnp.allclose(out, ref, rtol=2e-2, atol=2e-2), "mismatch vs reference"

    print("KERNEL_OK")
</pallas_src>

<mosaic_0001>
module attributes {stable_mosaic.version = 11 : i64} {
  func.func @proj_kernel(%arg0: memref<256x64xf32, #tpu.memory_space<vmem>>, %arg1: memref<64x129xf32, #tpu.memory_space<vmem>>, %arg2: memref<1x64xf32, #tpu.memory_space<vmem>>, %arg3: memref<256x128xbf16, #tpu.memory_space<vmem>>, %arg4: memref<256x1xf32, #tpu.memory_space<vmem>>, %arg5: memref<1x256xf32, #tpu.memory_space<vmem>>) attributes {dimension_semantics = [], scalar_prefetch = 0 : i64, scratch_operands = 0 : i64, tpu.core_type = #tpu.core_type<tc>} {
    %c0 = arith.constant 0 : index
    %c0_0 = arith.constant 0 : index
    %0 = vector.load %arg0[%c0, %c0_0] : memref<256x64xf32, #tpu.memory_space<vmem>>, vector<256x64xf32>
    %c0_1 = arith.constant 0 : index
    %c0_2 = arith.constant 0 : index
    %1 = vector.load %arg1[%c0_1, %c0_2] : memref<64x129xf32, #tpu.memory_space<vmem>>, vector<64x129xf32>
    %cst = arith.constant dense<0.000000e+00> : vector<256x129xf32>
    %2 = tpu.matmul %0, %1, %cst {dimension_numbers = #tpu.dot_dimension_numbers<[1], [0], [0], [1], [0, 0, 1, 1], [], []>} : vector<256x64xf32>, vector<64x129xf32>, vector<256x129xf32> -> vector<256x129xf32>
    %3 = vector.extract_strided_slice %2 {offsets = [0, 0], sizes = [256, 128], strides = [1, 1]} : vector<256x129xf32> to vector<256x128xf32>
    %4 = arith.truncf %3 : vector<256x128xf32> to vector<256x128xbf16>
    %c0_3 = arith.constant 0 : index
    %c0_4 = arith.constant 0 : index
    %5 = vector.load %arg3[%c0_3, %c0_4] : memref<256x128xbf16, #tpu.memory_space<vmem>>, vector<256x128xbf16>
    tpu.vector_store %arg3[%c0_3, %c0_4], %4 {strides = array<i32>} : memref<256x128xbf16, #tpu.memory_space<vmem>>, vector<256x128xbf16>,
    %6 = vector.extract_strided_slice %2 {offsets = [0, 128], sizes = [256, 1], strides = [1, 1]} : vector<256x129xf32> to vector<256x1xf32>
    %c0_5 = arith.constant 0 : index
    %c0_6 = arith.constant 0 : index
    %7 = vector.load %arg4[%c0_5, %c0_6] : memref<256x1xf32, #tpu.memory_space<vmem>>, vector<256x1xf32>
    tpu.vector_store %arg4[%c0_5, %c0_6], %6 {strides = array<i32>} : memref<256x1xf32, #tpu.memory_space<vmem>>, vector<256x1xf32>,
    %c0_7 = arith.constant 0 : index
    %c0_8 = arith.constant 0 : index
    %8 = vector.load %arg2[%c0_7, %c0_8] : memref<1x64xf32, #tpu.memory_space<vmem>>, vector<1x64xf32>
    %cst_9 = arith.constant dense<0.000000e+00> : vector<1x256xf32>
    %9 = tpu.matmul %8, %0, %cst_9 {dimension_numbers = #tpu.dot_dimension_numbers<[1], [1], [0], [0], [0, 0, 1, 0], [], []>} : vector<1x64xf32>, vector<256x64xf32>, vector<1x256xf32> -> vector<1x256xf32>
    %c0_10 = arith.constant 0 : index
    %c0_11 = arith.constant 0 : index
    %10 = vector.load %arg5[%c0_10, %c0_11] : memref<1x256xf32, #tpu.memory_space<vmem>>, vector<1x256xf32>
    tpu.vector_store %arg5[%c0_10, %c0_11], %9 {strides = array<i32>} : memref<1x256xf32, #tpu.memory_space<vmem>>, vector<1x256xf32>,
    return
  }
}

</mosaic_0001>

<bundles_post_ra>
// kernel: tpu_custom_call.1
= control target key start
LH: loop header
LB: loop body
LE: loop exit
PB: predicated region body
PF: predicated region fallthrough
CT: control target
= control target key end

     0   :  { %11 = vsyncpa [#allocation3], 0  ;;  %v1122_v7 = vmov 0.0   ;;  %vm67_vm0 = vcmask 523264   ;;  %s1613_s0 = inlined_call_operand.vmem [shape: f32[256,64], index: 0, kind: input, shape index: {}]   ;;  %s1614_s1 = inlined_call_operand.vmem [shape: f32[64,129], index: 1, kind: input, shape index: {}]   ;;  %s1615_s2 = inlined_call_operand.vmem [shape: f32[1,64], index: 2, kind: input, shape index: {}]   ;;  %s1616_s3 = inlined_call_operand.hbm [shape: bf16[256,128], index: 3, kind: output, shape index: {0}]   ;;  %s1617_s4 = inlined_call_operand.vmem [shape: f32[256,1], index: 4, kind: output, shape index: {1}]   ;;  %s1618_s5 = inlined_call_operand.hbm [shape: f32[1,256], index: 5, kind: output, shape index: {2}]  }
   0x1   :  { %v52_v0 = vld [vmem:[%s1614_s1 + $0x8] sm:$0xff]  ;;  %v54_v1 = vld [vmem:[%s1614_s1 + $0x18] sm:$0xff]  ;;  %v51_v2 = vld [vmem:[%s1614_s1] sm:$0xff]  ;;  %228 = vmatprep.mubr.f32.mxu0 %v1122_v7 }
   0x2   :  { %v1004_v3 = vpack.c.bf16 %v54_v1, %v52_v0  ;;  %v53_v4 = vld [vmem:[%s1614_s1 + $0x10] sm:$0xff]  ;;  %v56_v5 = vld [vmem:[%s1614_s1 + $0x28] sm:$0xff]  ;;  %v58_v6 = vld [vmem:[%s1614_s1 + $0x38] sm:$0xff] }
   0x3   :  { %v1006_v8 = vpack.c.bf16 %v53_v4, %v51_v2  ;;  %v1008_v9 = vpack.c.bf16 %v58_v6, %v56_v5  ;;  %v55_v10 = vld [vmem:[%s1614_s1 + $0x20] sm:$0xff]  ;;  %v57_v11 = vld [vmem:[%s1614_s1 + $0x30] sm:$0xff]  ;;  %v60_v12 = vld [vmem:[%s1614_s1 + $0x48] sm:$0xff] }
   0x4   :  { %1005 = vmatprep.subr.bf16.mxu0 %v1004_v3  ;;  %v62_v13 = vld [vmem:[%s1614_s1 + $0x58] sm:$0xff]  ;;  %v1010_v14 = vpack.c.bf16 %v57_v11, %v55_v10  ;;  %v59_v16 = vld [vmem:[%s1614_s1 + $0x40] sm:$0xff]  ;;  %v61_v17 = vld [vmem:[%s1614_s1 + $0x50] sm:$0xff] }
   0x5   :  { %1007 = vmatpush1.bf16.msra.mxu0 %v1006_v8  ;;  %v1012_v15 = vpack.c.bf16 %v62_v13, %v60_v12  ;;  %v64_v18 = vld [vmem:[%s1614_s1 + $0x68] sm:$0xff]  ;;  %v66_v19 = vld [vmem:[%s1614_s1 + $0x78] sm:$0xff]  ;;  %v1014_v20 = vpack.c.bf16 %v61_v17, %v59_v16  ;;  %v63_v21 = vld [vmem:[%s1614_s1 + $0x60] sm:$0xff] }
   0x6   :  { %1009 = vmatprep.subr.bf16.mxu0 %v1008_v9  ;;  %v1016_v22 = vpack.c.bf16 %v66_v19, %v64_v18  ;;  %v65_v23 = vld [vmem:[%s1614_s1 + $0x70] sm:$0xff]  ;;  %v19_v24 = vld [vmem:[%s1613_s0] sm:$0xff]  ;;  %v20_v25 = vld [vmem:[%s1613_s0 + $0x8] sm:$0xff] }
   0x7   :  { %v1216_v26 = vld [vmem:[%s1613_s0 + $0x80] sm:$0xff]  ;;  %v1221_v27 = vld [vmem:[%s1613_s0 + $0x88] sm:$0xff]  ;;  %vm1225_vm1 = vmpackc.low %vm67_vm0, %vm67_vm0  ;;  %v1023_v29 = vpack.c.bf16 %v20_v25, %v19_v24  ;;  %v1018_v32 = vpack.c.bf16 %v65_v23, %v63_v21 }
   0x8   :  { %v1020_v30 = vpack.c.bf16 %v1221_v27, %v1216_v26  ;;  %v1234_v31 = vld [vmem:[%s1613_s0 + $0x90] sm:$0xff]  ;;  %v1239_v33 = vld [vmem:[%s1613_s0 + $0x98] sm:$0xff]  ;;  %v1252_v35 = vld [vmem:[%s1613_s0 + $0xa0] sm:$0xff] }
   0x9   :  { %1011 = vmatpush1.bf16.msra.mxu0 %v1010_v14  ;;  %v1026_v34 = vpack.c.bf16 %v1239_v33, %v1234_v31  ;;  %v1257_v36 = vld [vmem:[%s1613_s0 + $0xa8] sm:$0xff]  ;;  %v1262_v37 = vld [vmem:[%s1615_s2] sm:$0x1] }
   0xa   :  { %1013 = vmatprep.subr.bf16.mxu0 %v1012_v15  ;;  %1022 = vmatprep.subr.msk.bf16.mxu1 %vm1225_vm1, %v1020_v30 }
   0xb   :  { %1025 = vmatpush3.bf16.xpose.msk.msra.mxu1 %vm1225_vm1, %v1023_v29 }
   0xc   :  { %1028 = vmatprep.subr.msk.bf16.mxu1 %vm1225_vm1, %v1026_v34 }
   0xd   :  { %1015 = vmatpush1.bf16.msra.mxu0 %v1014_v20 }
   0xe   :  { %1017 = vmatprep.subr.bf16.mxu0 %v1016_v22 }
  0x11   :  { %1019 = vmatpush1.bf16.msra.mxu0 %v1018_v32 }
  0x12   :  { %12 = vsyncpa [#allocation5], 0  ;;  %v21_v38 = vld [vmem:[%s1613_s0 + $0x10] sm:$0xff]  ;;  %v22_v39 = vld [vmem:[%s1613_s0 + $0x18] sm:$0xff]  ;;  %1002 = vmatprep.mubr.msk.f32.mxu1 %vm67_vm0, %v1262_v37  ;;  %v1032_v41 = vpack.c.bf16 %v1257_v36, %v1252_v35  ;;  %vm581_vm2 = vcmask 7168   ;;  %s1124_s12 = smov [#allocation4]  }
  0x13   :  { %v1029_v40 = vpack.c.bf16 %v22_v39, %v21_v38  ;;  %v1285_v42 = vld [vmem:[%s1613_s0 + $0xb0] sm:$0xff]  ;;  %v1290_v43 = vld [vmem:[%s1613_s0 + $0xb8] sm:$0xff]  ;;  %v23_v44 = vld [vmem:[%s1613_s0 + $0x20] sm:$0xff]  ;;  %s732_s13 = sshll.u32 %s1124_s12, 4  ;;  %s733_s13 = int_to_ptr.vmem [resolvable:$true] %s732_s13 }
  0x14   :  { %746 = vmatmul.mubr.msk.f32.vlgmr.msra.gmra.mrb[0].mxu0 %vm67_vm0, %v19_v24  ;;  %v24_v45 = vld [vmem:[%s1613_s0 + $0x28] sm:$0xff]  ;;  %v1038_v47 = vpack.c.bf16 %v1290_v43, %v1285_v42  ;;  %v1311_v48 = vld [vmem:[%s1613_s0 + $0xc0] sm:$0xff]  ;;  %v25_v50 = vld [vmem:[%s1613_s0 + $0x30] sm:$0xff]  ;;  %s1074_s18 = scalar_lea.vmem %s733_s13, 32  ;;  %p1079_p1 = scmp.lt.s32.totalorder %s733_s13, %s733_s13 }
  0x15   :  { %234 = vmatprep.mubr.f32.mxu0 %v1122_v7  ;;  %1031 = vmatpush3.bf16.xpose.msk.msra.mxu1 %vm1225_vm1, %v1029_v40  ;;  %v1035_v46 = vpack.c.bf16 %v24_v45, %v23_v44  ;;  %v1316_v49 = vld [vmem:[%s1613_s0 + $0xc8] sm:$0xff]  ;;  %v26_v51 = vld [vmem:[%s1613_s0 + $0x38] sm:$0xff]  ;;  %v1337_v54 = vld [vmem:[%s1613_s0 + $0xd0] sm:$0xff]  ;;  %p1075_p0 = scmp.ne.s32.totalorder %s733_s13, %s1074_s18  ;;  %p1080_p2 = scmp.lt.s32.totalorder %s1074_s18, %s1074_s18 }
  0x16   :  { %1034 = vmatprep.subr.msk.bf16.mxu1 %vm1225_vm1, %v1032_v41  ;;  %v1041_v52 = vpack.c.bf16 %v26_v51, %v25_v50  ;;  %v1044_v53 = vpack.c.bf16 %v1316_v49, %v1311_v48  ;;  %v1342_v55 = vld [vmem:[%s1613_s0 + $0xd8] sm:$0xff]  ;;  %v27_v56 = vld [vmem:[%s1613_s0 + $0x40] sm:$0xff]  ;;  %v28_v57 = vld [vmem:[%s1613_s0 + $0x48] sm:$0xff] }
  0x17   :  { %v1047_v58 = vpack.c.bf16 %v28_v57, %v27_v56  ;;  %v1050_v59 = vpack.c.bf16 %v1342_v55, %v1337_v54  ;;  %v47_v60 = vld [vmem:[%s1613_s0 + $0xe0] sm:$0xff]  ;;  %v48_v61 = vld [vmem:[%s1613_s0 + $0xe8] sm:$0xff]  ;;  %v29_v62 = vld [vmem:[%s1613_s0 + $0x50] sm:$0xff]  ;;  %p1081_p3 = por %p1080_p2, %p1079_p1 }
  0x18   :  { %747 = vmatmul.mubr.msk.f32.gmra.mrb[2].mxu0 %vm67_vm0, %v20_v25  ;;  %v30_v63 = vld [vmem:[%s1613_s0 + $0x58] sm:$0xff]  ;;  %v1056_v1 = vpack.c.bf16 %v48_v61, %v47_v60  ;;  %v49_v2 = vld [vmem:[%s1613_s0 + $0xf0] sm:$0xff]  ;;  %v31_v4 = vld [vmem:[%s1613_s0 + $0x60] sm:$0xff] }
  0x19   :  { %240 = vmatprep.mubr.f32.mxu0 %v1122_v7  ;;  %v1053_v0 = vpack.c.bf16 %v30_v63, %v29_v62  ;;  %v50_v3 = vld [vmem:[%s1613_s0 + $0xf8] sm:$0xff]  ;;  %v32_v5 = vld [vmem:[%s1613_s0 + $0x68] sm:$0xff]  ;;  %v33_v9 = vld [vmem:[%s1613_s0 + $0x70] sm:$0xff]  ;;  %p1082_p4 = pnand %p1081_p3, %p1075_p0 }
  0x1a   :  { %v1059_v6 = vpack.c.bf16 %v32_v5, %v31_v4  ;;  %v1062_v8 = vpack.c.bf16 %v50_v3, %v49_v2  ;;  %v34_v10 = vld [vmem:[%s1613_s0 + $0x78] sm:$0xff] }
  0x1b   :  { %v1065_v11 = vpack.c.bf16 %v34_v10, %v33_v9 }
  0x1c   :  { %748 = vmatmul.mubr.msk.f32.gmra.mrb[4].mxu0 %vm67_vm0, %v21_v38 }
  0x1d   :  { %246 = vmatprep.mubr.f32.mxu0 %v1122_v7  ;;  %1037 = vmatpush3.bf16.xpose.msk.msra.mxu1 %vm1225_vm1, %v1035_v46 }
  0x1e   :  { %1040 = vmatprep.subr.msk.bf16.mxu1 %vm1225_vm1, %v1038_v47 }
  0x20   :  { %749 = vmatmul.mubr.msk.f32.gmra.mrb[6].mxu0 %vm67_vm0, %v22_v39 }
  0x21   :  { %252 = vmatprep.mubr.f32.mxu0 %v1122_v7 }
  0x24   :  { %750 = vmatmul.mubr.msk.f32.gmra.mrb[8].mxu0 %vm67_vm0, %v23_v44 }
  0x25   :  { %258 = vmatprep.mubr.f32.mxu0 %v1122_v7  ;;  %1043 = vmatpush3.bf16.xpose.msk.msra.mxu1 %vm1225_vm1, %v1041_v52 }
  0x26   :  { %1046 = vmatprep.subr.msk.bf16.mxu1 %vm1225_vm1, %v1044_v53 }
  0x28   :  { %751 = vmatmul.mubr.msk.f32.gmra.mrb[10].mxu0 %vm67_vm0, %v24_v45  ;;  %v695_v45 = vlaneseq }
  0x29   :  { %264 = vmatprep.mubr.f32.mxu0 %v1122_v7 }
  0x2a   :  { %vm709_vm3 = vcmp.lt.s32.totalorder %v695_v45, 256 }
  0x2c   :  { %752 = vmatmul.mubr.msk.f32.gmra.mrb[12].mxu0 %vm67_vm0, %v25_v50  ;;  %v696_v50 = vshrl.u32 %v695_v45, 7 }
  0x2d   :  { %270 = vmatprep.mubr.f32.mxu0 %v1122_v7  ;;  %1049 = vmatpush3.bf16.xpose.msk.msra.mxu1 %vm1225_vm1, %v1047_v58 }
  0x2e   :  { %1052 = vmatprep.subr.msk.bf16.mxu1 %vm1225_vm1, %v1050_v59 }
  0x30   :  { %753 = vmatmul.mubr.msk.f32.gmra.mrb[14].mxu0 %vm67_vm0, %v26_v51 }
  0x31   :  { %276 = vmatprep.mubr.f32.mxu0 %v1122_v7 }
  0x34   :  { %754 = vmatmul.mubr.msk.f32.gmra.mrb[16].mxu0 %vm67_vm0, %v27_v56 }
  0x35   :  { %282 = vmatprep.mubr.f32.mxu0 %v1122_v7  ;;  %1055 = vmatpush3.bf16.xpose.msk.msra.mxu1 %vm1225_vm1, %v1053_v0 }
  0x36   :  { %1058 = vmatprep.subr.msk.bf16.mxu1 %vm1225_vm1, %v1056_v1 }
  0x38   :  { %755 = vmatmul.mubr.msk.f32.gmra.mrb[18].mxu0 %vm67_vm0, %v28_v57 }
  0x39   :  { %288 = vmatprep.mubr.f32.mxu0 %v1122_v7 }
  0x3c   :  { %756 = vmatmul.mubr.msk.f32.gmra.mrb[20].mxu0 %vm67_vm0, %v29_v62 }
  0x3d   :  { %294 = vmatprep.mubr.f32.mxu0 %v1122_v7  ;;  %1061 = vmatpush3.bf16.xpose.msk.msra.mxu1 %vm1225_vm1, %v1059_v6 }
  0x3e   :  { %1064 = vmatprep.subr.msk.bf16.mxu1 %vm1225_vm1, %v1062_v8 }
  0x40   :  { %757 = vmatmul.mubr.msk.f32.gmra.mrb[22].mxu0 %vm67_vm0, %v30_v63 }
  0x41   :  { %300 = vmatprep.mubr.f32.mxu0 %v1122_v7 }
  0x44   :  { %758 = vmatmul.mubr.msk.f32.gmra.mrb[24].mxu0 %vm67_vm0, %v31_v4 }
  0x45   :  { %306 = vmatprep.mubr.f32.mxu0 %v1122_v7  ;;  %1067 = vmatpush3.bf16.xpose.msk.msra.mxu1 %vm1225_vm1, %v1065_v11 }
  0x48   :  { %759 = vmatmul.mubr.msk.f32.gmra.mrb[26].mxu0 %vm67_vm0, %v32_v5 }
  0x49   :  { %312 = vmatprep.mubr.f32.mxu0 %v1122_v7 }
  0x4c   :  { %760 = vmatmul.mubr.msk.f32.gmra.mrb[28].mxu0 %vm67_vm0, %v33_v9  ;;  %1003 = vmatmul.mubr.msk.f32.vlgmr.msra.gmra.mrb[0].mxu1 %vm67_vm0, %v1262_v37 }
  0x4d   :  { %318 = vmatprep.mubr.f32.mxu0 %v1122_v7 }
  0x50   :  { %761 = vmatmul.mubr.msk.f32.gmra.mrb[30].mxu0 %vm67_vm0, %v34_v10 }
  0x51   :  { %324 = vmatprep.mubr.f32.mxu0 %v1122_v7 }
  0x54   :  { %762 = vmatmul.mubr.msk.f32.gmra.mrb[32].mxu0 %vm67_vm0, %v1216_v26 }
  0x55   :  { %330 = vmatprep.mubr.f32.mxu0 %v1122_v7 }
  0x58   :  { %763 = vmatmul.mubr.msk.f32.gmra.mrb[34].mxu0 %vm67_vm0, %v1221_v27 }
  0x59   :  { %336 = vmatprep.mubr.f32.mxu0 %v1122_v7 }
  0x5c   :  { %764 = vmatmul.mubr.msk.f32.gmra.mrb[36].mxu0 %vm67_vm0, %v1234_v31 }
  0x5d   :  { %342 = vmatprep.mubr.f32.mxu0 %v1122_v7 }
  0x60   :  { %765 = vmatmul.mubr.msk.f32.gmra.mrb[38].mxu0 %vm67_vm0, %v1239_v33 }
  0x61   :  { %348 = vmatprep.mubr.f32.mxu0 %v1122_v7 }
  0x64   :  { %766 = vmatmul.mubr.msk.f32.gmra.mrb[40].mxu0 %vm67_vm0, %v1252_v35 }
  0x65   :  { %354 = vmatprep.mubr.f32.mxu0 %v1122_v7 }
  0x68   :  { %767 = vmatmul.mubr.msk.f32.gmra.mrb[42].mxu0 %vm67_vm0, %v1257_v36 }
  0x69   :  { %360 = vmatprep.mubr.f32.mxu0 %v1122_v7 }
  0x6c   :  { %768 = vmatmul.mubr.msk.f32.gmra.mrb[44].mxu0 %vm67_vm0, %v1285_v42 }
  0x6d   :  { %366 = vmatprep.mubr.f32.mxu0 %v1122_v7 }
  0x70   :  { %769 = vmatmul.mubr.msk.f32.gmra.mrb[46].mxu0 %vm67_vm0, %v1290_v43  ;;  %v1123_v43 = vmov 1966171168  }
  0x71   :  { %372 = vmatprep.mubr.f32.mxu0 %v1122_v7  ;;  %v693_v44 = vunpack.c.l.s4 %v1123_v43 }
  0x74   :  { %770 = vmatmul.mubr.msk.f32.gmra.mrb[48].mxu0 %vm67_vm0, %v1311_v48 }
  0x75   :  { %378 = vmatprep.mubr.f32.mxu0 %v1122_v7 }
  0x78   :  { %771 = vmatmul.mubr.msk.f32.gmra.mrb[50].mxu0 %vm67_vm0, %v1316_v49  ;;  %v694_v49 = vunpack.c.0.s8 %v693_v44 }
  0x79   :  { %384 = vmatprep.mubr.f32.mxu0 %v1122_v7 }
  0x7c   :  { %772 = vmatmul.mubr.msk.f32.gmra.mrb[52].mxu0 %vm67_vm0, %v1337_v54  ;;  %v697_v54 = vsub.s32 %v694_v49, %v696_v50 }
  0x7d   :  { %390 = vmatprep.mubr.f32.mxu0 %v1122_v7 }
  0x80   :  { %773 = vmatmul.mubr.msk.f32.gmra.mrb[54].mxu0 %vm67_vm0, %v1342_v55 }
  0x81   :  { %396 = vmatprep.mubr.f32.mxu0 %v1122_v7 }
  0x84   :  { %774 = vmatmul.mubr.msk.f32.gmra.mrb[56].mxu0 %vm67_vm0, %v47_v60 }
  0x85   :  { %402 = vmatprep.mubr.f32.mxu0 %v1122_v7 }
  0x88   :  { %775 = vmatmul.mubr.msk.f32.gmra.mrb[58].mxu0 %vm67_vm0, %v48_v61 }
  0x89   :  { %408 = vmatprep.mubr.f32.mxu0 %v1122_v7 }
  0x8c   :  { %776 = vmatmul.mubr.msk.f32.gmra.mrb[60].mxu0 %vm67_vm0, %v49_v2 }
  0x8d   :  { %414 = vmatprep.mubr.f32.mxu0 %v1122_v7 }
  0x90   :  { %777 = vmatmul.mubr.msk.f32.gmra.mrb[62].mxu0 %vm67_vm0, %v50_v3 }
  0xe7   :  { %v230_v12 = vpop.f32.mrb[0].mxu0 }
  0xe8   :  { %v232_v13 = vpop.f32.mrb[1].mxu0 }
  0xe9   :  { %582 = vst.msk [vmem:[%s1617_s4] sm:$0xff] %vm581_vm2, %v232_v13 }
  0xeb   :  { %v236_v14 = vpop.f32.mrb[2].mxu0 }
  0xec   :  { %v878_v15 = vpack.c.bf16 %v236_v14, %v230_v12  ;;  %v238_v16 = vpop.f32.mrb[3].mxu0 }
  0xed   :  { %583 = vst.msk [vmem:[%s1617_s4 + $0x8] sm:$0xff] %vm581_vm2, %v238_v16 }
  0xee   :  { %879 = vst [vmem:[#allocation2] sm:$0xff] %v878_v15  }
  0xef   :  { %v242_v7 = vpop.f32.mrb[4].mxu0 }
  0xf0   :  { %v244_v17 = vpop.f32.mrb[5].mxu0 }
  0xf1   :  { %584 = vst.msk [vmem:[%s1617_s4 + $0x10] sm:$0xff] %vm581_vm2, %v244_v17 }
  0xf3   :  { %v248_v18 = vpop.f32.mrb[6].mxu0 }
  0xf4   :  { %v883_v19 = vpack.c.bf16 %v248_v18, %v242_v7  ;;  %v250_v20 = vpop.f32.mrb[7].mxu0 }
  0xf5   :  { %585 = vst.msk [vmem:[%s1617_s4 + $0x18] sm:$0xff] %vm581_vm2, %v250_v20 }
  0xf6   :  { %955 = vst [vmem:[#allocation2 + $0x8] sm:$0xff] %v883_v19  }
  0xf7   :  { %v254_v21 = vpop.f32.mrb[8].mxu0 }
  0xf8   :  { %v256_v22 = vpop.f32.mrb[9].mxu0 }
  0xf9   :  { %586 = vst.msk [vmem:[%s1617_s4 + $0x20] sm:$0xff] %vm581_vm2, %v256_v22 }
  0xfb   :  { %v260_v23 = vpop.f32.mrb[10].mxu0 }
  0xfc   :  { %v888_v24 = vpack.c.bf16 %v260_v23, %v254_v21  ;;  %v262_v25 = vpop.f32.mrb[11].mxu0 }
  0xfd   :  { %587 = vst.msk [vmem:[%s1617_s4 + $0x28] sm:$0xff] %vm581_vm2, %v262_v25 }
  0xfe   :  { %956 = vst [vmem:[#allocation2 + $0x10] sm:$0xff] %v888_v24  }
  0xff   :  { %v266_v26 = vpop.f32.mrb[12].mxu0 }
 0x100   :  { %v268_v27 = vpop.f32.mrb[13].mxu0 }
 0x101   :  { %588 = vst.msk [vmem:[%s1617_s4 + $0x30] sm:$0xff] %vm581_vm2, %v268_v27 }
 0x103   :  { %v272_v28 = vpop.f32.mrb[14].mxu0 }
 0x104   :  { %v893_v29 = vpack.c.bf16 %v272_v28, %v266_v26  ;;  %v274_v30 = vpop.f32.mrb[15].mxu0 }
 0x105   :  { %589 = vst.msk [vmem:[%s1617_s4 + $0x38] sm:$0xff] %vm581_vm2, %v274_v30 }
 0x106   :  { %957 = vst [vmem:[#allocation2 + $0x18] sm:$0xff] %v893_v29  }
 0x107   :  { %v278_v31 = vpop.f32.mrb[16].mxu0 }
 0x108   :  { %v280_v32 = vpop.f32.mrb[17].mxu0 }
 0x109   :  { %590 = vst.msk [vmem:[%s1617_s4 + $0x40] sm:$0xff] %vm581_vm2, %v280_v32 }
 0x10b   :  { %v284_v33 = vpop.f32.mrb[18].mxu0 }
 0x10c   :  { %v898_v34 = vpack.c.bf16 %v284_v33, %v278_v31  ;;  %v286_v35 = vpop.f32.mrb[19].mxu0 }
 0x10d   :  { %591 = vst.msk [vmem:[%s1617_s4 + $0x48] sm:$0xff] %vm581_vm2, %v286_v35 }
 0x10e   :  { %958 = vst [vmem:[#allocation2 + $0x20] sm:$0xff] %v898_v34  }
 0x10f   :  { %v290_v36 = vpop.f32.mrb[20].mxu0 }
 0x110   :  { %v292_v37 = vpop.f32.mrb[21].mxu0 }
 0x111   :  { %592 = vst.msk [vmem:[%s1617_s4 + $0x50] sm:$0xff] %vm581_vm2, %v292_v37 }
 0x113   :  { %v296_v38 = vpop.f32.mrb[22].mxu0 }
 0x114   :  { %v903_v39 = vpack.c.bf16 %v296_v38, %v290_v36  ;;  %v298_v40 = vpop.f32.mrb[23].mxu0 }
 0x115   :  { %593 = vst.msk [vmem:[%s1617_s4 + $0x58] sm:$0xff] %vm581_vm2, %v298_v40 }
 0x116   :  { %959 = vst [vmem:[#allocation2 + $0x28] sm:$0xff] %v903_v39  }
 0x117   :  { %v302_v41 = vpop.f32.mrb[24].mxu0 }
 0x118   :  { %v304_v42 = vpop.f32.mrb[25].mxu0 }
 0x119   :  { %594 = vst.msk [vmem:[%s1617_s4 + $0x60] sm:$0xff] %vm581_vm2, %v304_v42 }
 0x11b   :  { %v308_v46 = vpop.f32.mrb[26].mxu0 }
 0x11c   :  { %v908_v47 = vpack.c.bf16 %v308_v46, %v302_v41  ;;  %v310_v48 = vpop.f32.mrb[27].mxu0 }
 0x11d   :  { %595 = vst.msk [vmem:[%s1617_s4 + $0x68] sm:$0xff] %vm581_vm2, %v310_v48 }
 0x11e   :  { %960 = vst [vmem:[#allocation2 + $0x30] sm:$0xff] %v908_v47  }
 0x11f   :  { %v314_v51 = vpop.f32.mrb[28].mxu0  ;;  %v684_v53 = vpop.f32.mrb[0].mxu1 }
 0x120   :  { %v316_v52 = vpop.f32.mrb[29].mxu0  ;;  %v686_v55 = vpop.f32.mrb[1].mxu1 }
 0x121   :  { %596 = vst.msk [vmem:[%s1617_s4 + $0x70] sm:$0xff] %vm581_vm2, %v316_v52  ;;  %v691_v57 = vcombine.low %v684_v53, %v686_v55 }
 0x123   :  { %v320_v56 = vpop.f32.mrb[30].mxu0  ;;  %v698_v60 = vrot.slane %v691_v57, %v697_v54 }
 0x124   :  { %v913_v58 = vpack.c.bf16 %v320_v56, %v314_v51  ;;  %v322_v59 = vpop.f32.mrb[31].mxu0 }
 0x125   :  { %597 = vst.msk [vmem:[%s1617_s4 + $0x78] sm:$0xff] %vm581_vm2, %v322_v59  ;;  %v705_v62 = vrot.slane %v698_v60, %v697_v54 }
 0x126   :  { %961 = vst [vmem:[#allocation2 + $0x38] sm:$0xff] %v913_v58  }
 0x127   :  { %v326_v61 = vpop.f32.mrb[32].mxu0  ;;  %711 = vst.msk [vmem:[#allocation4] sm:$0x3] %vm709_vm3, %v705_v62 }
 0x128   :  { %v328_v63 = vpop.f32.mrb[33].mxu0 }
 0x129   :  { %598 = vst.msk [vmem:[%s1617_s4 + $0x80] sm:$0xff] %vm581_vm2, %v328_v63 }
 0x12a   :  { %1085 = shalt.err (!%p1082_p4)
}
 0x12b   :  { %s1086_s2 = scalar_lea.hbm %s1618_s5, 32 }
 0x12c   :  { %p1087_p5 = scmp.ne.s32.totalorder %s1618_s5, %s1086_s2  ;;  %p1090_p6 = scmp.lt.u32.totalorder %s1086_s2, %s1618_s5 }
 0x12e   :  { %p1092_p7 = pnand %p1090_p6, %p1087_p5 }
 0x130   :  { %1095 = shalt.err (!%p1092_p7)
}
 0x131   :  { %735 = dma.vmem_to_hbm [thread:$0]  %s733_s13, 32, %s1618_s5, [#allocation5]   ;;  %v332_v0 = vpop.f32.mrb[34].mxu0 }
 0x132   :  { %v918_v1 = vpack.c.bf16 %v332_v0, %v326_v61  ;;  %v334_v2 = vpop.f32.mrb[35].mxu0  ;;  %s1125_s24 = smov [#allocation2]  }
 0x133   :  { %599 = vst.msk [vmem:[%s1617_s4 + $0x88] sm:$0xff] %vm581_vm2, %v334_v2  ;;  %v338_v3 = vpop.f32.mrb[36].mxu0  ;;  %s717_s25 = sshll.u32 %s1125_s24, 4  ;;  %s718_s25 = int_to_ptr.vmem [resolvable:$true] %s717_s25 }
 0x134   :  { %962 = vst [vmem:[#allocation2 + $0x40] sm:$0xff] %v918_v1   ;;  %v340_v4 = vpop.f32.mrb[37].mxu0  ;;  %s1096_s30 = scalar_lea.vmem %s718_s25, 2048  ;;  %p1101_p9 = scmp.lt.s32.totalorder %s718_s25, %s718_s25 }
 0x135   :  { %600 = vst.msk [vmem:[%s1617_s4 + $0x90] sm:$0xff] %vm581_vm2, %v340_v4  ;;  %v344_v5 = vpop.f32.mrb[38].mxu0  ;;  %p1097_p8 = scmp.ne.s32.totalorder %s718_s25, %s1096_s30  ;;  %p1102_p10 = scmp.lt.s32.totalorder %s1096_s30, %s1096_s30 }
 0x136   :  { %v923_v6 = vpack.c.bf16 %v344_v5, %v338_v3  ;;  %v346_v8 = vpop.f32.mrb[39].mxu0 }
 0x137   :  { %601 = vst.msk [vmem:[%s1617_s4 + $0x98] sm:$0xff] %vm581_vm2, %v346_v8  ;;  %v350_v9 = vpop.f32.mrb[40].mxu0  ;;  %p1103_p11 = por %p1102_p10, %p1101_p9 }
 0x138   :  { %963 = vst [vmem:[#allocation2 + $0x48] sm:$0xff] %v923_v6   ;;  %v352_v10 = vpop.f32.mrb[41].mxu0 }
 0x139   :  { %602 = vst.msk [vmem:[%s1617_s4 + $0xa0] sm:$0xff] %vm581_vm2, %v352_v10  ;;  %p1104_p12 = pnand %p1103_p11, %p1097_p8 }
 0x13b   :  { %v356_v11 = vpop.f32.mrb[42].mxu0 }
 0x13c   :  { %v928_v12 = vpack.c.bf16 %v356_v11, %v350_v9  ;;  %v358_v13 = vpop.f32.mrb[43].mxu0 }
 0x13d   :  { %603 = vst.msk [vmem:[%s1617_s4 + $0xa8] sm:$0xff] %vm581_vm2, %v358_v13 }
 0x13e   :  { %964 = vst [vmem:[#allocation2 + $0x50] sm:$0xff] %v928_v12  }
 0x13f   :  { %v362_v14 = vpop.f32.mrb[44].mxu0 }
 0x140   :  { %v364_v15 = vpop.f32.mrb[45].mxu0 }
 0x141   :  { %604 = vst.msk [vmem:[%s1617_s4 + $0xb0] sm:$0xff] %vm581_vm2, %v364_v15 }
 0x143   :  { %v368_v16 = vpop.f32.mrb[46].mxu0 }
 0x144   :  { %v933_v7 = vpack.c.bf16 %v368_v16, %v362_v14  ;;  %v370_v17 = vpop.f32.mrb[47].mxu0 }
 0x145   :  { %605 = vst.msk [vmem:[%s1617_s4 + $0xb8] sm:$0xff] %vm581_vm2, %v370_v17 }
 0x146   :  { %965 = vst [vmem:[#allocation2 + $0x58] sm:$0xff] %v933_v7  }
 0x147   :  { %v374_v18 = vpop.f32.mrb[48].mxu0 }
 0x148   :  { %v376_v19 = vpop.f32.mrb[49].mxu0 }
 0x149   :  { %606 = vst.msk [vmem:[%s1617_s4 + $0xc0] sm:$0xff] %vm581_vm2, %v376_v19 }
 0x14b   :  { %v380_v20 = vpop.f32.mrb[50].mxu0 }
 0x14c   :  { %v938_v21 = vpack.c.bf16 %v380_v20, %v374_v18  ;;  %v382_v22 = vpop.f32.mrb[51].mxu0 }
 0x14d   :  { %607 = vst.msk [vmem:[%s1617_s4 + $0xc8] sm:$0xff] %vm581_vm2, %v382_v22 }
 0x14e   :  { %966 = vst [vmem:[#allocation2 + $0x60] sm:$0xff] %v938_v21  }
 0x14f   :  { %v386_v23 = vpop.f32.mrb[52].mxu0 }
 0x150   :  { %v388_v24 = vpop.f32.mrb[53].mxu0 }
 0x151   :  { %608 = vst.msk [vmem:[%s1617_s4 + $0xd0] sm:$0xff] %vm581_vm2, %v388_v24 }
 0x153   :  { %v392_v25 = vpop.f32.mrb[54].mxu0 }
 0x154   :  { %v943_v26 = vpack.c.bf16 %v392_v25, %v386_v23  ;;  %v394_v27 = vpop.f32.mrb[55].mxu0 }
 0x155   :  { %609 = vst.msk [vmem:[%s1617_s4 + $0xd8] sm:$0xff] %vm581_vm2, %v394_v27 }
 0x156   :  { %967 = vst [vmem:[#allocation2 + $0x68] sm:$0xff] %v943_v26  }
 0x157   :  { %v398_v28 = vpop.f32.mrb[56].mxu0 }
 0x158   :  { %v400_v29 = vpop.f32.mrb[57].mxu0 }
 0x159   :  { %610 = vst.msk [vmem:[%s1617_s4 + $0xe0] sm:$0xff] %vm581_vm2, %v400_v29 }
 0x15b   :  { %v404_v30 = vpop.f32.mrb[58].mxu0 }
 0x15c   :  { %v948_v31 = vpack.c.bf16 %v404_v30, %v398_v28  ;;  %v406_v32 = vpop.f32.mrb[59].mxu0 }
 0x15d   :  { %611 = vst.msk [vmem:[%s1617_s4 + $0xe8] sm:$0xff] %vm581_vm2, %v406_v32 }
 0x15e   :  { %968 = vst [vmem:[#allocation2 + $0x70] sm:$0xff] %v948_v31  }
 0x15f   :  { %v410_v33 = vpop.f32.mrb[60].mxu0 }
 0x160   :  { %v412_v34 = vpop.f32.mrb[61].mxu0 }
 0x161   :  { %612 = vst.msk [vmem:[%s1617_s4 + $0xf0] sm:$0xff] %vm581_vm2, %v412_v34 }
 0x163   :  { %v416_v35 = vpop.f32.mrb[62].mxu0 }
 0x164   :  { %v953_v36 = vpack.c.bf16 %v416_v35, %v410_v33  ;;  %v418_v37 = vpop.f32.mrb[63].mxu0 }
 0x165   :  { %613 = vst.msk [vmem:[%s1617_s4 + $0xf8] sm:$0xff] %vm581_vm2, %v418_v37 }
 0x166   :  { %969 = vst [vmem:[#allocation2 + $0x78] sm:$0xff] %v953_v36  }
 0x167   :  { %1107 = shalt.err (!%p1104_p12)
}
 0x168   :  { %s1108_s7 = scalar_lea.hbm %s1616_s3, 2048 }
 0x169   :  { %p1109_p13 = scmp.ne.s32.totalorder %s1616_s3, %s1108_s7  ;;  %p1112_p0 = scmp.lt.u32.totalorder %s1108_s7, %s1616_s3 }
 0x16b   :  { %p1114_p1 = pnand %p1112_p0, %p1109_p13 }
 0x16d   :  { %1117 = shalt.err (!%p1114_p1)
}
 0x16e   :  { %s1126_s4 = smov 64   ;;  %s1127_s0 = smov 4  }
 0x16f   :  { %723 = dma.vmem_to_hbm [thread:$0]  %s718_s25, 2048, %s1616_s3, [#allocation3], %s1126_s4, %s1126_s4, %s1127_s0  }
 0x170   :  { %1118 = dma.done.wait [#allocation3], 2048  }
 0x171   :  { %1119 = vsyncadd [#allocation3], 4294965248 }
 0x172   :  { %1120 = dma.done.wait [#allocation5], 32  }
 0x173   :  { %1121 = vsyncadd [#allocation5], 4294967264 }
 0x174   :  { %744 = vsyncpa [#allocation3], 1 }
 0x175   :  { %745 = vsyncpa [#allocation5], 1 }

</bundles_post_ra>
